<compile_context>
chip_gen: v7x
topology: tpu7x:2x2x1
jax: 0.10.0
libtpu: 0.0.40
codegen_flags: <defaults>
</compile_context>

<pallas_src>
import functools
import random as pyrandom

import numpy as np
import jax
import jax.numpy as jnp
from jax.experimental import pallas as pl
from jax.experimental.pallas import tpu as pltpu


def _pad8(n):
    return -(-n // 8) * 8


def make_param_layout(D, S, npad, cpad):
    """Row offsets for the packed parameter slab (lane width = D, 8-row aligned)."""
    offs, r = {}, 0
    for name, rows in (
        ("w_init", cpad),   # [uf_w; if_w; uf_b; if_b; 0...]      (cpad, D)
        ("gcn_w", D),
        ("gcn_b", 1),
        ("bn_g", S),        # gamma pre-broadcast to (S, D) lane-dense
        ("bn_b", S),
        ("emb", npad),      # [uid_emb; sid_emb; 0...]            (npad, D)
        ("w1", 2 * D),      # MLP layer-1 weight, lanes padded 16 -> D
        ("b1", 1),
        ("w2", D),          # real (16, 8) in top-left of (D, D)
        ("b2", 1),
        ("w3", D),          # real (8, 1)  in top-left of (D, D)
        ("b3", 1),
    ):
        offs[name] = r
        r += _pad8(rows)
    return offs, r


# --------------------------- fused forward kernel ----------------------------
def glbp_fused_kernel(
    alpha_ref,      # SMEM (1,) f32
    subidx_ref,     # (B*S, 1) int32  global node id per subgraph row
    ididx_ref,      # (2B, 1)  int32  [user_indexes ; NU + item_indexes]
    roots_ref,      # (2, B, 1) int32 local root positions (user, item)
    raw_ref,        # (npad, cpad) f32 padded raw info + bias-indicator columns
    adj_ref,        # (B*S, B*S) f32 block-diagonal subgraph adjacency
    prm_ref,        # (ROWS, D) f32 packed parameter slab
    o_ref,          # (B, 1) f32
    *, lo,
):
    f32 = jnp.float32
    alpha = alpha_ref[0]
    BS = subidx_ref.shape[0]
    B = roots_ref.shape[1]
    S = BS // B
    D = prm_ref.shape[1]
    npad, cpad = raw_ref.shape

    def P(name, rows):
        off = lo[name]
        return prm_ref[off:off + rows, :]

    # ---- 1) gather RAW rows, then Linear(+bias via indicator cols) + L2 norm
    lane_n = jax.lax.broadcasted_iota(jnp.int32, (BS, npad), 1)
    oh_sub = jnp.where(lane_n == subidx_ref[...], 1.0, 0.0).astype(f32)     # (BS, npad)
    raw_g = jnp.dot(oh_sub, raw_ref[...], preferred_element_type=f32)       # (BS, cpad)
    y0 = jnp.dot(raw_g, P("w_init", cpad), preferred_element_type=f32)      # (BS, D)
    ss = jnp.sum(y0 * y0, axis=1, keepdims=True)
    # F.normalize(p=2, dim=1): y / max(||y||, 1e-12)  (rsqrt -> EUP slot)
    sub_x = y0 * jax.lax.rsqrt(jnp.maximum(ss, 1e-24))

    # ---- 2) GraphConvolution: one support matmul + one block-diag adj push
    support = jnp.dot(sub_x, P("gcn_w", D), preferred_element_type=f32)     # (BS, D)
    conv = jnp.dot(adj_ref[...], support, preferred_element_type=f32)       # (BS, D)
    conv = conv.reshape(B, S, D) + P("gcn_b", 1).reshape(1, 1, D)

    # ---- 3) BatchNorm1d(S) train mode, two-pass (centered) variance --------
    cnt = float(B * D)
    mean = jnp.sum(jnp.sum(conv, axis=2, keepdims=True), axis=0, keepdims=True) / cnt
    cen = conv - mean
    var = jnp.sum(jnp.sum(cen * cen, axis=2, keepdims=True), axis=0, keepdims=True) / cnt
    y = cen * jax.lax.rsqrt(var + 1e-5)
    y = y * P("bn_g", S).reshape(1, S, D) + P("bn_b", S).reshape(1, S, D)
    y = jnp.where(y >= 0, y, 0.01 * y)                                      # leaky_relu

    # ---- 4) root gather: per-batch (B,S,1) one-hot + sublane reduce (no MXU)
    sub_iota = jax.lax.broadcasted_iota(jnp.int32, (B, S, 1), 1)
    oh_r0 = jnp.where(sub_iota == roots_ref[0].reshape(B, 1, 1), 1.0, 0.0).astype(f32)
    oh_r1 = jnp.where(sub_iota == roots_ref[1].reshape(B, 1, 1), 1.0, 0.0).astype(f32)
    v0 = jnp.sum(y * oh_r0, axis=1)                                         # (B, D)
    v1 = jnp.sum(y * oh_r1, axis=1)                                         # (B, D)

    # ---- 5) id-embedding gather: both halves in one one-hot push -----------
    lane_n2 = jax.lax.broadcasted_iota(jnp.int32, (2 * B, npad), 1)
    oh_id = jnp.where(lane_n2 == ididx_ref[...], 1.0, 0.0).astype(f32)      # (2B, npad)
    idvec = jnp.dot(oh_id, P("emb", npad), preferred_element_type=f32)      # (2B, D)

    # ---- 6) alpha fusion + 3-layer ReLU MLP (D-lane padded; pad cols stay 0)
    res_u = alpha * idvec[0:B] + (1.0 - alpha) * v0
    res_i = alpha * idvec[B:2 * B] + (1.0 - alpha) * v1
    w1 = P("w1", 2 * D)
    h = (jnp.dot(res_u, w1[0:D], preferred_element_type=f32)
         + jnp.dot(res_i, w1[D:2 * D], preferred_element_type=f32)
         + P("b1", 1))
    h = jnp.maximum(h, 0.0)
    h = jnp.maximum(jnp.dot(h, P("w2", D), preferred_element_type=f32) + P("b2", 1), 0.0)
    h = jnp.maximum(jnp.dot(h, P("w3", D), preferred_element_type=f32) + P("b3", 1), 0.0)
    o_ref[...] = h[:, 0:1]


# ------------------------------ jitted wrapper --------------------------------
@jax.jit
def glbp_forward(alpha_arr, sub_idx, id_idx, roots, raw, adj_bd, prm):
    B = roots.shape[1]
    D = prm.shape[1]
    S = sub_idx.shape[0] // B
    npad, cpad = raw.shape
    lo, rows = make_param_layout(D, S, npad, cpad)
    assert rows == prm.shape[0]
    kernel = functools.partial(glbp_fused_kernel, lo=lo)
    in_specs = ([pl.BlockSpec(memory_space=pltpu.MemorySpace.SMEM)]
                + [pl.BlockSpec(memory_space=pltpu.MemorySpace.VMEM)] * 6)
    return pl.pallas_call(
        kernel,
        out_shape=jax.ShapeDtypeStruct((B, 1), jnp.float32),
        in_specs=in_specs,
        out_specs=pl.BlockSpec(memory_space=pltpu.MemorySpace.VMEM),
    )(alpha_arr, sub_idx, id_idx, roots, raw, adj_bd, prm)


# ---------------- host-side subgraph sampling (as in the reference) ----------
# TODO(synk): data-dependent random subgraph sampling (random.sample + list
# manipulation) has no clean Pallas equivalent; it stays on host, exactly as in
# the PyTorch reference's build_GCN_input / subgraph_sampling.
def subgraph_sampling(rng, adj_matrix, row_id, col_id, num_user, num_item, subgraph_size):
    sample_uids = rng.sample(range(num_user), subgraph_size // 2)
    sample_sids = rng.sample(range(num_user, num_user + num_item), subgraph_size // 2)
    if row_id not in sample_uids:
        sample_uids[0] = row_id
    if col_id not in sample_sids:
        sample_sids[0] = col_id
    sample_ids = sorted(sample_uids + sample_sids)
    sub = adj_matrix[sample_ids, :][:, sample_ids].astype(np.float32).copy()
    sub[sub == 1] = 0.2
    np.fill_diagonal(sub, 1.0)
    return sample_ids, sub


if __name__ == "__main__":
    NUM_USER, NUM_ITEM = 6, 6
    LATENT_DIM = 32
    SUBGRAPH_SIZE = 8
    ALPHA = 0.6
    N_UCOLS, N_ICOLS = 5, 4
    B = 2
    S, D = SUBGRAPH_SIZE, LATENT_DIM
    NPAD = _pad8(NUM_USER + NUM_ITEM)          # 16
    CPAD = _pad8(N_UCOLS + N_ICOLS + 2)        # 16 (features + 2 bias-indicator cols)

    key = jax.random.PRNGKey(0)
    ks = jax.random.split(key, 10)

    # parameters (deterministic synthetic init)
    uid_emb = jax.random.normal(ks[0], (NUM_USER, D), jnp.float32)
    sid_emb = jax.random.normal(ks[1], (NUM_ITEM, D), jnp.float32)
    user_infos = jax.random.normal(ks[2], (NUM_USER, N_UCOLS), jnp.float32)
    item_infos = jax.random.normal(ks[3], (NUM_ITEM, N_ICOLS), jnp.float32)
    uf_w = jax.random.normal(ks[4], (N_UCOLS, D), jnp.float32) * 0.1
    uf_b = jnp.zeros((D,), jnp.float32)
    if_w = jax.random.normal(ks[5], (N_ICOLS, D), jnp.float32) * 0.1
    if_b = jnp.zeros((D,), jnp.float32)
    gcn_w = jax.random.normal(ks[6], (D, D), jnp.float32) * 0.1
    gcn_b = jnp.zeros((D,), jnp.float32)
    bn_gamma = jnp.ones((S,), jnp.float32)
    bn_beta = jnp.zeros((S,), jnp.float32)
    mlp_w1 = jax.random.normal(ks[7], (2 * D, 16), jnp.float32) * 0.1
    mlp_b1 = jnp.zeros((16,), jnp.float32)
    mlp_w2 = jax.random.normal(ks[8], (16, 8), jnp.float32) * 0.1
    mlp_b2 = jnp.zeros((8,), jnp.float32)
    mlp_w3 = jax.random.normal(ks[9], (8, 1), jnp.float32) * 0.1
    mlp_b3 = jnp.zeros((1,), jnp.float32)

    # synthetic bipartite rating adjacency
    np_rng = np.random.RandomState(0)
    N = NUM_USER + NUM_ITEM
    adj = np.zeros((N, N), dtype=np.float32)
    rt = (np_rng.rand(NUM_USER, NUM_ITEM) > 0.5).astype(np.float32)
    adj[:NUM_USER, NUM_USER:] = rt
    adj[NUM_USER:, :NUM_USER] = rt.T

    user_indexes = np.array([1, 4], dtype=np.int32)
    item_indexes = np.array([2, 0], dtype=np.int32)

    # ------------- host-side random subgraph sampling (reference glue) -------
    py_rng = pyrandom.Random(0)
    sub_adjs_l, sub_idx_l, sub_roots_l = [], [], []
    for i in range(B):
        row_id = int(user_indexes[i])
        col_id = int(item_indexes[i]) + NUM_USER
        ids, sadj = subgraph_sampling(py_rng, adj, row_id, col_id,
                                      NUM_USER, NUM_ITEM, S)
        sub_idx_l.append(ids)
        sub_adjs_l.append(sadj)
        sub_roots_l.append([ids.index(row_id), ids.index(col_id)])
    sub_adjs = np.stack(sub_adjs_l).astype(np.float32)             # (B, S, S)
    sub_idx_np = np.array(sub_idx_l, dtype=np.int32)               # (B, S)
    sub_roots_np = np.array(sub_roots_l, dtype=np.int32)           # (B, 2)

    # ------------------- kernel-side packed inputs (host-side) ---------------
    # raw info slab with bias-indicator columns (user cols | item cols | 1u | 1i)
    raw = np.zeros((NPAD, CPAD), np.float32)
    raw[:NUM_USER, :N_UCOLS] = np.asarray(user_infos)
    raw[:NUM_USER, N_UCOLS + N_ICOLS] = 1.0
    raw[NUM_USER:NUM_USER + NUM_ITEM, N_UCOLS:N_UCOLS + N_ICOLS] = np.asarray(item_infos)
    raw[NUM_USER:NUM_USER + NUM_ITEM, N_UCOLS + N_ICOLS + 1] = 1.0

    # block-diagonal subgraph adjacency -> one MXU push in-kernel
    adj_bd = np.zeros((B * S, B * S), np.float32)
    for b in range(B):
        adj_bd[b * S:(b + 1) * S, b * S:(b + 1) * S] = sub_adjs[b]

    # packed parameter slab
    lo, ROWS = make_param_layout(D, S, NPAD, CPAD)
    prm = np.zeros((ROWS, D), np.float32)
    prm[lo["w_init"]:lo["w_init"] + N_UCOLS] = np.asarray(uf_w)
    prm[lo["w_init"] + N_UCOLS:lo["w_init"] + N_UCOLS + N_ICOLS] = np.asarray(if_w)
    prm[lo["w_init"] + N_UCOLS + N_ICOLS] = np.asarray(uf_b)
    prm[lo["w_init"] + N_UCOLS + N_ICOLS + 1] = np.asarray(if_b)
    prm[lo["gcn_w"]:lo["gcn_w"] + D] = np.asarray(gcn_w)
    prm[lo["gcn_b"]] = np.asarray(gcn_b)
    prm[lo["bn_g"]:lo["bn_g"] + S] = np.asarray(bn_gamma)[:, None]   # lane-dense bcast
    prm[lo["bn_b"]:lo["bn_b"] + S] = np.asarray(bn_beta)[:, None]
    prm[lo["emb"]:lo["emb"] + NUM_USER] = np.asarray(uid_emb)
    prm[lo["emb"] + NUM_USER:lo["emb"] + NUM_USER + NUM_ITEM] = np.asarray(sid_emb)
    prm[lo["w1"]:lo["w1"] + 2 * D, :16] = np.asarray(mlp_w1)
    prm[lo["b1"], :16] = np.asarray(mlp_b1)
    prm[lo["w2"]:lo["w2"] + 16, :8] = np.asarray(mlp_w2)
    prm[lo["b2"], :8] = np.asarray(mlp_b2)
    prm[lo["w3"]:lo["w3"] + 8, :1] = np.asarray(mlp_w3)
    prm[lo["b3"], :1] = np.asarray(mlp_b3)

    # integer index inputs
    sub_idx_flat = sub_idx_np.reshape(B * S, 1)                     # (B*S, 1)
    id_idx = np.concatenate([user_indexes,
                             NUM_USER + item_indexes]).astype(np.int32).reshape(2 * B, 1)
    roots = sub_roots_np.T.reshape(2, B, 1).astype(np.int32)        # (2, B, 1)
    alpha_arr = jnp.full((1,), ALPHA, jnp.float32)

    # ------------------------------ fused forward ----------------------------
    out = glbp_forward(alpha_arr,
                       jnp.asarray(sub_idx_flat), jnp.asarray(id_idx),
                       jnp.asarray(roots), jnp.asarray(raw),
                       jnp.asarray(adj_bd), jnp.asarray(prm))
    out = jax.block_until_ready(out)

    # --------------------- pure-JAX reference (PyTorch math) -----------------
    def reference_forward():
        def l2norm(y):
            n = jnp.sqrt(jnp.sum(y * y, axis=1, keepdims=True))
            return y / jnp.maximum(n, 1e-12)
        uf = l2norm(user_infos @ uf_w + uf_b)
        itf = l2norm(item_infos @ if_w + if_b)
        x = jnp.concatenate([uf, itf], axis=0)
        sub_x = x[jnp.asarray(sub_idx_np)]                               # (B,S,D)
        support = sub_x @ gcn_w
        conv = jnp.einsum("bij,bjd->bid", jnp.asarray(sub_adjs), support) + gcn_b
        mean = jnp.mean(conv, axis=(0, 2), keepdims=True)
        var = jnp.var(conv, axis=(0, 2), keepdims=True)                  # biased
        y = (conv - mean) / jnp.sqrt(var + 1e-5)
        y = y * bn_gamma.reshape(1, S, 1) + bn_beta.reshape(1, S, 1)
        y = jnp.where(y >= 0, y, 0.01 * y)
        gcn_vec = y[jnp.arange(B)[:, None], jnp.asarray(sub_roots_np)]   # (B,2,D)
        gcn_res = jnp.concatenate([gcn_vec[:, 0, :], gcn_vec[:, 1, :]], axis=1)
        id_vec = jnp.concatenate([uid_emb[user_indexes], sid_emb[item_indexes]], axis=1)
        res = ALPHA * id_vec + (1.0 - ALPHA) * gcn_res
        h = jnp.maximum(res @ mlp_w1 + mlp_b1, 0.0)
        h = jnp.maximum(h @ mlp_w2 + mlp_b2, 0.0)
        return jnp.maximum(h @ mlp_w3 + mlp_b3, 0.0)

    ref = jax.block_until_ready(reference_forward())
    np.testing.assert_allclose(np.asarray(out), np.asarray(ref), rtol=1e-3, atol=1e-3)

    assert out.shape == (B, 1) and out.dtype == jnp.float32
    print("KERNEL_OK")
</pallas_src>

<mosaic_0001>
module attributes {stable_mosaic.version = 11 : i64} {
  func.func @glbp_fused_kernel(%arg0: memref<1xf32, #tpu.memory_space<smem>>, %arg1: memref<16x1xi32, #tpu.memory_space<vmem>>, %arg2: memref<4x1xi32, #tpu.memory_space<vmem>>, %arg3: memref<2x2x1xi32, #tpu.memory_space<vmem>>, %arg4: memref<16x16xf32, #tpu.memory_space<vmem>>, %arg5: memref<16x16xf32, #tpu.memory_space<vmem>>, %arg6: memref<240x32xf32, #tpu.memory_space<vmem>>, %arg7: memref<2x1xf32, #tpu.memory_space<vmem>>) attributes {dimension_semantics = [], scalar_prefetch = 0 : i64, scratch_operands = 0 : i64, tpu.core_type = #tpu.core_type<tc>} {
    %c0 = arith.constant 0 : index
    %0 = memref.load %arg0[%c0] : memref<1xf32, #tpu.memory_space<smem>>
    %1 = tpu.iota {dimensions = array<i32: 1>} : vector<16x16xi32>
    %c0_0 = arith.constant 0 : index
    %c0_1 = arith.constant 0 : index
    %2 = vector.load %arg1[%c0_0, %c0_1] : memref<16x1xi32, #tpu.memory_space<vmem>>, vector<16x1xi32>
    %3 = vector.broadcast %2 : vector<16x1xi32> to vector<16x16xi32>
    %4 = arith.cmpi eq, %1, %3 : vector<16x16xi32>
    %cst = arith.constant 1.000000e+00 : f32
    %cst_2 = arith.constant 0.000000e+00 : f32
    %5 = vector.broadcast %cst : f32 to vector<16x16xf32>
    %6 = vector.broadcast %cst_2 : f32 to vector<16x16xf32>
    %7 = arith.select %4, %5, %6 : vector<16x16xi1>, vector<16x16xf32>
    %c0_3 = arith.constant 0 : index
    %c0_4 = arith.constant 0 : index
    %8 = vector.load %arg4[%c0_3, %c0_4] : memref<16x16xf32, #tpu.memory_space<vmem>>, vector<16x16xf32>
    %cst_5 = arith.constant dense<0.000000e+00> : vector<16x16xf32>
    %9 = tpu.matmul %7, %8, %cst_5 {dimension_numbers = #tpu.dot_dimension_numbers<[1], [0], [0], [1], [0, 0, 1, 1], [], []>} : vector<16x16xf32>, vector<16x16xf32>, vector<16x16xf32> -> vector<16x16xf32>
    %c0_6 = arith.constant 0 : index
    %c0_7 = arith.constant 0 : index
    %10 = vector.load %arg6[%c0_6, %c0_7] : memref<240x32xf32, #tpu.memory_space<vmem>>, vector<16x32xf32>
    %cst_8 = arith.constant dense<0.000000e+00> : vector<16x32xf32>
    %11 = tpu.matmul %9, %10, %cst_8 {dimension_numbers = #tpu.dot_dimension_numbers<[1], [0], [0], [1], [0, 0, 1, 1], [], []>} : vector<16x16xf32>, vector<16x32xf32>, vector<16x32xf32> -> vector<16x32xf32>
    %12 = arith.mulf %11, %11 : vector<16x32xf32>
    %cst_9 = arith.constant dense<0.000000e+00> : vector<16xf32>
    %13 = vector.multi_reduction <add>, %12, %cst_9 [1] : vector<16x32xf32> to vector<16xf32>
    %14 = vector.shape_cast %13 : vector<16xf32> to vector<16x1xf32>
    %cst_10 = arith.constant 1.000000e-24 : f32
    %15 = vector.broadcast %cst_10 : f32 to vector<16x1xf32>
    %16 = arith.maximumf %14, %15 : vector<16x1xf32>
    %17 = math.rsqrt %16 : vector<16x1xf32>
    %18 = vector.broadcast %17 : vector<16x1xf32> to vector<16x32xf32>
    %19 = arith.mulf %11, %18 : vector<16x32xf32>
    %c16 = arith.constant 16 : index
    %c0_11 = arith.constant 0 : index
    %20 = vector.load %arg6[%c16, %c0_11] : memref<240x32xf32, #tpu.memory_space<vmem>>, vector<32x32xf32>
    %cst_12 = arith.constant dense<0.000000e+00> : vector<16x32xf32>
    %21 = tpu.matmul %19, %20, %cst_12 {dimension_numbers = #tpu.dot_dimension_numbers<[1], [0], [0], [1], [0, 0, 1, 1], [], []>} : vector<16x32xf32>, vector<32x32xf32>, vector<16x32xf32> -> vector<16x32xf32>
    %c0_13 = arith.constant 0 : index
    %c0_14 = arith.constant 0 : index
    %22 = vector.load %arg5[%c0_13, %c0_14] : memref<16x16xf32, #tpu.memory_space<vmem>>, vector<16x16xf32>
    %cst_15 = arith.constant dense<0.000000e+00> : vector<16x32xf32>
    %23 = tpu.matmul %22, %21, %cst_15 {dimension_numbers = #tpu.dot_dimension_numbers<[1], [0], [0], [1], [0, 0, 1, 1], [], []>} : vector<16x16xf32>, vector<16x32xf32>, vector<16x32xf32> -> vector<16x32xf32>
    %24 = vector.shape_cast %23 : vector<16x32xf32> to vector<2x8x32xf32>
    %c48 = arith.constant 48 : index
    %c0_16 = arith.constant 0 : index
    %25 = vector.load %arg6[%c48, %c0_16] : memref<240x32xf32, #tpu.memory_space<vmem>>, vector<1x32xf32>
    %26 = vector.shape_cast %25 : vector<1x32xf32> to vector<1x1x32xf32>
    %27 = vector.broadcast %26 : vector<1x1x32xf32> to vector<2x8x32xf32>
    %28 = arith.addf %24, %27 : vector<2x8x32xf32>
    %cst_17 = arith.constant dense<0.000000e+00> : vector<2x8xf32>
    %29 = vector.multi_reduction <add>, %28, %cst_17 [2] : vector<2x8x32xf32> to vector<2x8xf32>
    %30 = vector.shape_cast %29 : vector<2x8xf32> to vector<2x8x1xf32>
    %cst_18 = arith.constant dense<0.000000e+00> : vector<8x1xf32>
    %31 = vector.multi_reduction <add>, %30, %cst_18 [0] : vector<2x8x1xf32> to vector<8x1xf32>
    %32 = vector.shape_cast %31 : vector<8x1xf32> to vector<1x8x1xf32>
    %cst_19 = arith.constant 6.400000e+01 : f32
    %33 = vector.broadcast %cst_19 : f32 to vector<1x8x1xf32>
    %34 = arith.divf %32, %33 : vector<1x8x1xf32>
    %35 = vector.broadcast %34 : vector<1x8x1xf32> to vector<2x8x32xf32>
    %36 = arith.subf %28, %35 : vector<2x8x32xf32>
    %37 = arith.mulf %36, %36 : vector<2x8x32xf32>
    %cst_20 = arith.constant dense<0.000000e+00> : vector<2x8xf32>
    %38 = vector.multi_reduction <add>, %37, %cst_20 [2] : vector<2x8x32xf32> to vector<2x8xf32>
    %39 = vector.shape_cast %38 : vector<2x8xf32> to vector<2x8x1xf32>
    %cst_21 = arith.constant dense<0.000000e+00> : vector<8x1xf32>
    %40 = vector.multi_reduction <add>, %39, %cst_21 [0] : vector<2x8x1xf32> to vector<8x1xf32>
    %41 = vector.shape_cast %40 : vector<8x1xf32> to vector<1x8x1xf32>
    %cst_22 = arith.constant 6.400000e+01 : f32
    %42 = vector.broadcast %cst_22 : f32 to vector<1x8x1xf32>
    %43 = arith.divf %41, %42 : vector<1x8x1xf32>
    %cst_23 = arith.constant 9.99999974E-6 : f32
    %44 = vector.broadcast %cst_23 : f32 to vector<1x8x1xf32>
    %45 = arith.addf %43, %44 : vector<1x8x1xf32>
    %46 = math.rsqrt %45 : vector<1x8x1xf32>
    %47 = vector.broadcast %46 : vector<1x8x1xf32> to vector<2x8x32xf32>
    %48 = arith.mulf %36, %47 : vector<2x8x32xf32>
    %c56 = arith.constant 56 : index
    %c0_24 = arith.constant 0 : index
    %49 = vector.load %arg6[%c56, %c0_24] : memref<240x32xf32, #tpu.memory_space<vmem>>, vector<8x32xf32>
    %50 = vector.shape_cast %49 : vector<8x32xf32> to vector<1x8x32xf32>
    %51 = vector.broadcast %50 : vector<1x8x32xf32> to vector<2x8x32xf32>
    %52 = arith.mulf %48, %51 : vector<2x8x32xf32>
    %c64 = arith.constant 64 : index
    %c0_25 = arith.constant 0 : index
    %53 = vector.load %arg6[%c64, %c0_25] : memref<240x32xf32, #tpu.memory_space<vmem>>, vector<8x32xf32>
    %54 = vector.shape_cast %53 : vector<8x32xf32> to vector<1x8x32xf32>
    %55 = vector.broadcast %54 : vector<1x8x32xf32> to vector<2x8x32xf32>
    %56 = arith.addf %52, %55 : vector<2x8x32xf32>
    %cst_26 = arith.constant 0.000000e+00 : f32
    %57 = vector.broadcast %cst_26 : f32 to vector<2x8x32xf32>
    %58 = arith.cmpf oge, %56, %57 : vector<2x8x32xf32>
    %cst_27 = arith.constant 0.00999999977 : f32
    %59 = vector.broadcast %cst_27 : f32 to vector<2x8x32xf32>
    %60 = arith.mulf %59, %56 : vector<2x8x32xf32>
    %61 = arith.select %58, %56, %60 : vector<2x8x32xi1>, vector<2x8x32xf32>
    %62 = tpu.iota {dimensions = array<i32: 1>} : vector<2x8x1xi32>
    %c0_28 = arith.constant 0 : index
    %c0_29 = arith.constant 0 : index
    %c0_30 = arith.constant 0 : index
    %63 = vector.load %arg3[%c0_28, %c0_29, %c0_30] : memref<2x2x1xi32, #tpu.memory_space<vmem>>, vector<1x2x1xi32>
    %64 = vector.shape_cast %63 : vector<1x2x1xi32> to vector<2x1xi32>
    %65 = vector.shape_cast %64 : vector<2x1xi32> to vector<2x1x1xi32>
    %66 = vector.broadcast %65 : vector<2x1x1xi32> to vector<2x8x1xi32>
    %67 = arith.cmpi eq, %62, %66 : vector<2x8x1xi32>
    %cst_31 = arith.constant 1.000000e+00 : f32
    %cst_32 = arith.constant 0.000000e+00 : f32
    %68 = vector.broadcast %cst_31 : f32 to vector<2x8x1xf32>
    %69 = vector.broadcast %cst_32 : f32 to vector<2x8x1xf32>
    %70 = arith.select %67, %68, %69 : vector<2x8x1xi1>, vector<2x8x1xf32>
    %c1 = arith.constant 1 : index
    %c0_33 = arith.constant 0 : index
    %c0_34 = arith.constant 0 : index
    %71 = vector.load %arg3[%c1, %c0_33, %c0_34] : memref<2x2x1xi32, #tpu.memory_space<vmem>>, vector<1x2x1xi32>
    %72 = vector.shape_cast %71 : vector<1x2x1xi32> to vector<2x1xi32>
    %73 = vector.shape_cast %72 : vector<2x1xi32> to vector<2x1x1xi32>
    %74 = vector.broadcast %73 : vector<2x1x1xi32> to vector<2x8x1xi32>
    %75 = arith.cmpi eq, %62, %74 : vector<2x8x1xi32>
    %cst_35 = arith.constant 1.000000e+00 : f32
    %cst_36 = arith.constant 0.000000e+00 : f32
    %76 = vector.broadcast %cst_35 : f32 to vector<2x8x1xf32>
    %77 = vector.broadcast %cst_36 : f32 to vector<2x8x1xf32>
    %78 = arith.select %75, %76, %77 : vector<2x8x1xi1>, vector<2x8x1xf32>
    %79 = vector.broadcast %70 : vector<2x8x1xf32> to vector<2x8x32xf32>
    %80 = arith.mulf %61, %79 : vector<2x8x32xf32>
    %cst_37 = arith.constant dense<0.000000e+00> : vector<2x32xf32>
    %81 = vector.multi_reduction <add>, %80, %cst_37 [1] : vector<2x8x32xf32> to vector<2x32xf32>
    %82 = vector.broadcast %78 : vector<2x8x1xf32> to vector<2x8x32xf32>
    %83 = arith.mulf %61, %82 : vector<2x8x32xf32>
    %cst_38 = arith.constant dense<0.000000e+00> : vector<2x32xf32>
    %84 = vector.multi_reduction <add>, %83, %cst_38 [1] : vector<2x8x32xf32> to vector<2x32xf32>
    %85 = tpu.iota {dimensions = array<i32: 1>} : vector<4x16xi32>
    %c0_39 = arith.constant 0 : index
    %c0_40 = arith.constant 0 : index
    %86 = vector.load %arg2[%c0_39, %c0_40] : memref<4x1xi32, #tpu.memory_space<vmem>>, vector<4x1xi32>
    %87 = vector.broadcast %86 : vector<4x1xi32> to vector<4x16xi32>
    %88 = arith.cmpi eq, %85, %87 : vector<4x16xi32>
    %cst_41 = arith.constant 1.000000e+00 : f32
    %cst_42 = arith.constant 0.000000e+00 : f32
    %89 = vector.broadcast %cst_41 : f32 to vector<4x16xf32>
    %90 = vector.broadcast %cst_42 : f32 to vector<4x16xf32>
    %91 = arith.select %88, %89, %90 : vector<4x16xi1>, vector<4x16xf32>
    %c72 = arith.constant 72 : index
    %c0_43 = arith.constant 0 : index
    %92 = vector.load %arg6[%c72, %c0_43] : memref<240x32xf32, #tpu.memory_space<vmem>>, vector<16x32xf32>
    %cst_44 = arith.constant dense<0.000000e+00> : vector<4x32xf32>
    %93 = tpu.matmul %91, %92, %cst_44 {dimension_numbers = #tpu.dot_dimension_numbers<[1], [0], [0], [1], [0, 0, 1, 1], [], []>} : vector<4x16xf32>, vector<16x32xf32>, vector<4x32xf32> -> vector<4x32xf32>
    %94 = vector.extract_strided_slice %93 {offsets = [0, 0], sizes = [2, 32], strides = [1, 1]} : vector<4x32xf32> to vector<2x32xf32>
    %95 = vector.broadcast %0 : f32 to vector<2x32xf32>
    %96 = arith.mulf %95, %94 : vector<2x32xf32>
    %cst_45 = arith.constant 1.000000e+00 : f32
    %97 = arith.subf %cst_45, %0 : f32
    %98 = vector.broadcast %97 : f32 to vector<2x32xf32>
    %99 = arith.mulf %98, %81 : vector<2x32xf32>
    %100 = arith.addf %96, %99 : vector<2x32xf32>
    %101 = vector.extract_strided_slice %93 {offsets = [2, 0], sizes = [2, 32], strides = [1, 1]} : vector<4x32xf32> to vector<2x32xf32>
    %102 = vector.broadcast %0 : f32 to vector<2x32xf32>
    %103 = arith.mulf %102, %101 : vector<2x32xf32>
    %cst_46 = arith.constant 1.000000e+00 : f32
    %104 = arith.subf %cst_46, %0 : f32
    %105 = vector.broadcast %104 : f32 to vector<2x32xf32>
    %106 = arith.mulf %105, %84 : vector<2x32xf32>
    %107 = arith.addf %103, %106 : vector<2x32xf32>
    %c88 = arith.constant 88 : index
    %c0_47 = arith.constant 0 : index
    %108 = vector.load %arg6[%c88, %c0_47] : memref<240x32xf32, #tpu.memory_space<vmem>>, vector<64x32xf32>
    %109 = vector.extract_strided_slice %108 {offsets = [0, 0], sizes = [32, 32], strides = [1, 1]} : vector<64x32xf32> to vector<32x32xf32>
    %cst_48 = arith.constant dense<0.000000e+00> : vector<2x32xf32>
    %110 = tpu.matmul %100, %109, %cst_48 {dimension_numbers = #tpu.dot_dimension_numbers<[1], [0], [0], [1], [0, 0, 1, 1], [], []>} : vector<2x32xf32>, vector<32x32xf32>, vector<2x32xf32> -> vector<2x32xf32>
    %111 = vector.extract_strided_slice %108 {offsets = [32, 0], sizes = [32, 32], strides = [1, 1]} : vector<64x32xf32> to vector<32x32xf32>
    %cst_49 = arith.constant dense<0.000000e+00> : vector<2x32xf32>
    %112 = tpu.matmul %107, %111, %cst_49 {dimension_numbers = #tpu.dot_dimension_numbers<[1], [0], [0], [1], [0, 0, 1, 1], [], []>} : vector<2x32xf32>, vector<32x32xf32>, vector<2x32xf32> -> vector<2x32xf32>
    %113 = arith.addf %110, %112 : vector<2x32xf32>
    %c152 = arith.constant 152 : index
    %c0_50 = arith.constant 0 : index
    %114 = vector.load %arg6[%c152, %c0_50] : memref<240x32xf32, #tpu.memory_space<vmem>>, vector<1x32xf32>
    %115 = vector.broadcast %114 : vector<1x32xf32> to vector<2x32xf32>
    %116 = arith.addf %113, %115 : vector<2x32xf32>
    %cst_51 = arith.constant 0.000000e+00 : f32
    %117 = vector.broadcast %cst_51 : f32 to vector<2x32xf32>
    %118 = arith.maximumf %116, %117 : vector<2x32xf32>
    %c160 = arith.constant 160 : index
    %c0_52 = arith.constant 0 : index
    %119 = vector.load %arg6[%c160, %c0_52] : memref<240x32xf32, #tpu.memory_space<vmem>>, vector<32x32xf32>
    %cst_53 = arith.constant dense<0.000000e+00> : vector<2x32xf32>
    %120 = tpu.matmul %118, %119, %cst_53 {dimension_numbers = #tpu.dot_dimension_numbers<[1], [0], [0], [1], [0, 0, 1, 1], [], []>} : vector<2x32xf32>, vector<32x32xf32>, vector<2x32xf32> -> vector<2x32xf32>
    %c192 = arith.constant 192 : index
    %c0_54 = arith.constant 0 : index
    %121 = vector.load %arg6[%c192, %c0_54] : memref<240x32xf32, #tpu.memory_space<vmem>>, vector<1x32xf32>
    %122 = vector.broadcast %121 : vector<1x32xf32> to vector<2x32xf32>
    %123 = arith.addf %120, %122 : vector<2x32xf32>
    %cst_55 = arith.constant 0.000000e+00 : f32
    %124 = vector.broadcast %cst_55 : f32 to vector<2x32xf32>
    %125 = arith.maximumf %123, %124 : vector<2x32xf32>
    %c200 = arith.constant 200 : index
    %c0_56 = arith.constant 0 : index
    %126 = vector.load %arg6[%c200, %c0_56] : memref<240x32xf32, #tpu.memory_space<vmem>>, vector<32x32xf32>
    %cst_57 = arith.constant dense<0.000000e+00> : vector<2x32xf32>
    %127 = tpu.matmul %125, %126, %cst_57 {dimension_numbers = #tpu.dot_dimension_numbers<[1], [0], [0], [1], [0, 0, 1, 1], [], []>} : vector<2x32xf32>, vector<32x32xf32>, vector<2x32xf32> -> vector<2x32xf32>
    %c232 = arith.constant 232 : index
    %c0_58 = arith.constant 0 : index
    %128 = vector.load %arg6[%c232, %c0_58] : memref<240x32xf32, #tpu.memory_space<vmem>>, vector<1x32xf32>
    %129 = vector.broadcast %128 : vector<1x32xf32> to vector<2x32xf32>
    %130 = arith.addf %127, %129 : vector<2x32xf32>
    %cst_59 = arith.constant 0.000000e+00 : f32
    %131 = vector.broadcast %cst_59 : f32 to vector<2x32xf32>
    %132 = arith.maximumf %130, %131 : vector<2x32xf32>
    %133 = vector.extract_strided_slice %132 {offsets = [0, 0], sizes = [2, 1], strides = [1, 1]} : vector<2x32xf32> to vector<2x1xf32>
    %c0_60 = arith.constant 0 : index
    %c0_61 = arith.constant 0 : index
    %134 = vector.load %arg7[%c0_60, %c0_61] : memref<2x1xf32, #tpu.memory_space<vmem>>, vector<2x1xf32>
    tpu.vector_store %arg7[%c0_60, %c0_61], %133 {strides = array<i32>} : memref<2x1xf32, #tpu.memory_space<vmem>>, vector<2x1xf32>,
    return
  }
}

</mosaic_0001>

<bundles_post_ra>
// kernel: glbp_forward.1
= control target key start
LH: loop header
LB: loop body
LE: loop exit
PB: predicated region body
PF: predicated region fallthrough
CT: control target
= control target key end

     0   :  { %v1210_v0 = vmov 0   ;;  %v28_v10 = vlaneseq  ;;  %vm44_vm0 = vcmask 130048   ;;  %v1211_v13 = vmov 0.0   ;;  %s1440_s1 = inlined_call_operand.vmem [shape: s32[16,1], index: 1, kind: input, shape index: {}]   ;;  %s1441_s4 = inlined_call_operand.vmem [shape: f32[16,16], index: 4, kind: input, shape index: {}]   ;;  %s1442_s2 = inlined_call_operand.vmem [shape: s32[4,1], index: 2, kind: input, shape index: {}]   ;;  %s1443_s6 = inlined_call_operand.vmem [shape: f32[240,32], index: 6, kind: input, shape index: {}]   ;;  %s1444_s5 = inlined_call_operand.vmem [shape: f32[16,16], index: 5, kind: input, shape index: {}]   ;;  %s1445_s3 = inlined_call_operand.vmem [shape: s32[2,2,1], index: 3, kind: input, shape index: {}]   ;;  %s1446_s0 = inlined_call_operand.<no memory space> [shape: f32[1], index: 0, kind: input, shape index: {}]   ;;  %s1447_s7 = inlined_call_operand.vmem [shape: f32[2,1], index: 7, kind: output, shape index: {}]  }
   0x1   :  { %1192 = vset.pattern.permute.xlu0 %v1210_v0  ;;  %v30_v1 = vld [vmem:[%s1440_s1] sm:$0xff]  ;;  %1193 = vset.pattern.permute.xlu1 %v1210_v0  ;;  %v43_v3 = vld [vmem:[%s1441_s4 + $0x8] sm:$0xff]  ;;  %vm211_vm3 = vcmask 261120   ;;  %v224_v25 = vld [vmem:[%s1443_s6 + $0x10] sm:$0xff]  ;;  %v1212_v40 = vmov 0.0|0.0   ;;  %vm1213_vm4 = vmmov 0  }
   0x2   :  { %33 = vperm.xlu0 %1192, %v30_v1   ;;  %v42_v2 = vld [vmem:[%s1441_s4] sm:$0xff]  ;;  %v31_v4 = vld [vmem:[%s1440_s1 + $0x8] sm:$0xff]  ;;  %v1277_v11 = vand.u32 127, %v28_v10  ;;  %v225_v26 = vld [vmem:[%s1443_s6 + $0x18] sm:$0xff]  ;;  %v1214_v50 = vmov 1966171168  }
   0x3   :  { %v1140_v5 = vpack.c.bf16 %v43_v3, %v42_v2  ;;  %v561_v6 = vld [vmem:[%s1442_s2] sm:$0xf]  ;;  %v127_v8 = vld [vmem:[%s1443_s6 + $0x8] sm:$0xff]  ;;  %v1148_v28 = vpack.c.bf16 %v225_v26, %v224_v25  ;;  %v568_v45 = vld [vmem:[%s1443_s6 + $0x50] sm:$0xff]  ;;  %v448_v51 = vunpack.c.l.s4 %v1214_v50  ;;  %v437_v52 = vshrl.u32 %v28_v10, 7 }
   0x4   :  { %v126_v7 = vld [vmem:[%s1443_s6] sm:$0xff]  ;;  %v227_v29 = vld [vmem:[%s1443_s6 + $0x28] sm:$0xff]  ;;  %v1004_v55 = vld [vmem:[%s1443_s6 + $0x30] ss:$0 sm:$0xff]  ;;  %vm650_vm12 = vcmask 1041409   ;;  %vm658_vm13 = vcmask 1043459  }
   0x5   :  { %1141 = vmatprep.subr.bf16.mxu0 %v1140_v5  ;;  %v1144_v9 = vpack.c.bf16 %v127_v8, %v126_v7  ;;  %v226_v27 = vld [vmem:[%s1443_s6 + $0x20] sm:$0xff]  ;;  %v567_v44 = vld [vmem:[%s1443_s6 + $0x48] sm:$0xff]  ;;  %v449_v53 = vunpack.c.0.s8 %v448_v51  ;;  %v463_v1 = vsub.s32 0, %v437_v52  ;;  %v424_v50 = vld [vmem:[%s1443_s6 + $0x38] sm:$0xff]  ;;  %vm990_vm14 = vcmask 1024  }
   0x6   :  { %36 = vperm.xlu0 %1192, %v31_v4   ;;  %1143 = vmatpush3.bf16.msra.mxu0 %v1140_v5  ;;  %v1152_v30 = vpack.c.bf16 %v227_v29, %v226_v27  ;;  %v309_v39 = vld [vmem:[%s1444_s5] sm:$0xff]  ;;  %v310_v47 = vld [vmem:[%s1444_s5 + $0x8] sm:$0xff]  ;;  %v1161_v48 = vpack.c.bf16 %v568_v45, %v567_v44  ;;  %s644_s5 = ssub.f32 1.0, %s1446_s0 }
   0x7   :  { %1145 = vmatprep.subr.bf16.mxu1 %v1144_v9  ;;  %1149 = vmatprep.subr.bf16.mxu0 %v1148_v28  ;;  %v1007_v54 = vld.sshfl [vmem:[%s1445_s3 + $0x2] sm:$0x11 pattern:$0x75316420]  ;;  %v452_v57 = vsub.s32 %v449_v53, %v437_v52 }
   0x8   :  { %1147 = vmatpush3.bf16.msra.mxu1 %v1144_v9  ;;  %v482_v58 = vcombine.high %v1007_v54, %v1007_v54  ;;  %v427_v53 = vld [vmem:[%s1443_s6 + $0x40] sm:$0xff] }
   0x9   :  { %v489_v2 = vrot.slane %v1007_v54, %v452_v57 }
   0xa   :  { %563 = vperm.xlu0 %1192, %v561_v6   ;;  %v496_v3 = vrot.slane %v482_v58, %v452_v57 }
   0xb   :  { %v500_v5 = vrot.slane %v489_v2, %v463_v1 }
   0xc   :  { %v504_v6 = vrot.slane %v496_v3, %v463_v1 }
   0xd   :  { %vm505_vm6 = vcmp.eq.s32.totalorder %v437_v52, %v500_v5 }
   0xe   :  { %vm506_vm7 = vcmp.eq.s32.totalorder %v437_v52, %v504_v6  ;;  %v507_v7 = vsel %vm505_vm6, 1.0, %v1211_v13 }
   0xf   :  { %v508_v8 = vsel %vm506_vm7, 1.0, %v1211_v13 }
  0x10   :  { %v1194_v9 = vpack.i.bf16 %v508_v8, %v507_v7 }
  0x81   :  { %v34_v12 = vpop.permute.xlu0 %33 }
  0x82   :  { %vm38_vm1 = vcmp.eq.s32.totalorder %v1277_v11, %v34_v12 }
  0x83   :  { %v40_v14 = vsel %vm38_vm1, 1.0, %v1211_v13 }
  0x84   :  { %1061 = vmatprep.mubr.msk.f32.mxu0 %vm44_vm0, %v40_v14 }
  0x85   :  { %v37_v15 = vpop.permute.xlu0 %36 }
  0x86   :  { %vm39_vm2 = vcmp.eq.s32.totalorder %v1277_v11, %v37_v15 }
  0x87   :  { %v41_v16 = vsel %vm39_vm2, 1.0, %v1211_v13 }
  0x88   :  { %1062 = vmatmul.mubr.msk.f32.vlgmr.msra.gmra.mrb[0].mxu0 %vm44_vm0, %v41_v16 }
  0x89   :  { %1151 = vmatpush3.bf16.msra.mxu0 %v1148_v28  ;;  %v564_v46 = vpop.permute.xlu0 %563 }
  0x8a   :  { %1153 = vmatprep.subr.bf16.mxu0 %v1152_v30  ;;  %vm565_vm5 = vcmp.eq.s32.totalorder %v1277_v11, %v564_v46 }
  0x8b   :  { %v566_v49 = vsel %vm565_vm5, 1.0, %v1211_v13 }
  0x8d   :  { %1155 = vmatpush3.bf16.msra.mxu0 %v1152_v30  ;;  %v662_v30 = vld [vmem:[%s1443_s6 + $0x58] sm:$0xff] }
  0x8e   :  { %1163 = vmatprep.subr.bf16.mxu0 %v1212_v40 }
 0x15b   :  { %v1063_v17 = vpop.f32.mrb[0].mxu0 }
 0x15c   :  { %v117_v18 = vpop.f32.mrb[1].mxu0 }
 0x15d   :  { %1068 = vmatprep.mubr.msk.f32.mxu1 %vm44_vm0, %v117_v18 }
 0x15e   :  { %1069 = vmatmul.mubr.msk.f32.vlgmr.msra.gmra.mrb[0].mxu1 %vm44_vm0, %v1063_v17  ;;  %v1005_v17 = vld.sshfl [vmem:[%s1445_s3] sm:$0x11 pattern:$0x75316420] }
 0x15f   :  { %1086 = vmatprep.mubr.msk.f32.mxu1 %vm44_vm0, %v309_v39  ;;  %v668_v39 = vld [vmem:[%s1443_s6 + $0x88] sm:$0xff] }
 0x231   :  { %v1070_v19 = vpop.f32.mrb[0].mxu1 }
 0x232   :  { %v200_v20 = vpop.f32.mrb[1].mxu1  ;;  %v210_v22 = vmul.f32 %v1070_v19, %v1070_v19 }
 0x233   :  { %v209_v21 = vmul.f32 %v200_v20, %v200_v20 }
 0x234   :  { %v215_v24 = vsel %vm211_vm3, %v210_v22, 0.0 }
 0x235   :  { %v212_v23 = vsel %vm211_vm3, %v209_v21, 0.0  ;;  %v446_v21 = vcombine.high %v1005_v17, %v1005_v17 }
 0x236   :  { %213 = vadd.xlane.f32.xlu1 %v212_v23  ;;  %v453_v23 = vrot.slane %v1005_v17, %v452_v57 }
 0x238   :  { %v464_v25 = vrot.slane %v453_v23, %v463_v1 }
 0x23a   :  { %216 = vadd.xlane.f32.xlu1 %v215_v24  ;;  %v460_v24 = vrot.slane %v446_v21, %v452_v57  ;;  %vm469_vm8 = vcmp.eq.s32.totalorder %v437_v52, %v464_v25 }
 0x23b   :  { %v471_v27 = vsel %vm469_vm8, 1.0, %v1211_v13 }
 0x23c   :  { %v468_v26 = vrot.slane %v460_v24, %v463_v1 }
 0x23e   :  { %vm470_vm9 = vcmp.eq.s32.totalorder %v437_v52, %v468_v26 }
 0x23f   :  { %v472_v28 = vsel %vm470_vm9, 1.0, %v1211_v13 }
 0x240   :  { %v1199_v29 = vpack.i.bf16 %v472_v28, %v471_v27 }
 0x2c3   :  { %v214_v31 = vpop.xlane.xlu1 %213 }
 0x2c4   :  { %v218_v32 = vmax.f32 %v214_v31, 1e-24  ;;  %v663_v31 = vld [vmem:[%s1443_s6 + $0x60] sm:$0xff] }
 0x2c6   :  { %1204 = vrsqrt.f32 %v218_v32  ;;  %v1170_v32 = vpack.c.bf16 %v663_v31, %v662_v30 }
 0x2c7   :  { %v217_v33 = vpop.xlane.xlu1 %216 }
 0x2c8   :  { %v219_v34 = vmax.f32 %v217_v33, 1e-24  ;;  %v666_v33 = vld [vmem:[%s1443_s6 + $0x78] sm:$0xff] }
 0x2ca   :  { %1206 = vrsqrt.f32 %v219_v34  ;;  %v667_v34 = vld [vmem:[%s1443_s6 + $0x80] sm:$0xff] }
 0x2d0   :  { %v1205_v35 = vpop.eup %1204 }
 0x2d1   :  { %v222_v36 = vmul.f32 %v1205_v35, %v200_v20  ;;  %v1164_v35 = vpack.c.bf16 %v667_v34, %v666_v33  ;;  %v642_v33 = vstv %s1446_s0  ;;  %v645_v34 = vstv %s644_s5 }
 0x2d3   :  { %1079 = vmatprep.mubr.msk.f32.mxu0 %vm211_vm3, %v222_v36  ;;  %v664_v36 = vld [vmem:[%s1443_s6 + $0x68] sm:$0xff] }
 0x2d4   :  { %v1207_v37 = vpop.eup %1206 }
 0x2d5   :  { %v223_v38 = vmul.f32 %v1207_v37, %v1070_v19  ;;  %v665_v37 = vld [vmem:[%s1443_s6 + $0x70] sm:$0xff] }
 0x2d7   :  { %1080 = vmatmul.mubr.msk.f32.vlgmr.msra.gmra.mrb[2].mxu0 %vm211_vm3, %v223_v38  ;;  %v1173_v38 = vpack.c.bf16 %v665_v37, %v664_v36 }
 0x2d8   :  { %1104 = vmatprep.mubr.msk.f32.mxu0 %vm1213_vm4, %v1211_v13  ;;  %1165 = vmatpush3.bf16.msra.mxu0 %v1164_v35 }
 0x2d9   :  { %1166 = vmatprep.subr.bf16.mxu0 %v1212_v40 }
 0x3aa   :  { %v1081_v41 = vpop.f32.mrb[2].mxu0 }
 0x3ab   :  { %v300_v42 = vpop.f32.mrb[3].mxu0 }
 0x3ac   :  { %v1156_v43 = vpack.c.bf16 %v1081_v41, %v300_v42  ;;  %v669_v41 = vld [vmem:[%s1443_s6 + $0x90] sm:$0xff] }
 0x3ad   :  { %v1167_v42 = vpack.c.bf16 %v669_v41, %v668_v39 }
 0x3ae   :  { %1157 = vmatprep.subr.bf16.mxu1 %v1156_v43 }
 0x3af   :  { %1159 = vmatpush3.bf16.msra.mxu1 %v1156_v43  ;;  %1168 = vmatpush3.bf16.msra.mxu0 %v1167_v42 }
 0x3b0   :  { %1160 = vmatprep.subr.bf16.mxu1 %v1212_v40  ;;  %1175 = vmatprep.subr.bf16.mxu0 %v1212_v40 }
 0x3b2   :  { %1087 = vmatmul.mubr.msk.f32.vlgmr.msra.gmra.mrb[2].mxu1 %vm44_vm0, %v310_v47 }
 0x3b3   :  { %1162 = vmatpush3.bf16.msra.mxu1 %v1161_v48  ;;  %1093 = vmatprep.mubr.msk.f32.mxu1 %vm1213_vm4, %v1211_v13 }
 0x3b4   :  { %1169 = vmatprep.subr.bf16.mxu1 %v1212_v40 }
 0x3b6   :  { %1094 = vmatmul.mubr.msk.f32.vlgmr.msra.gmra.mrb[4].mxu1 %vm44_vm0, %v566_v49 }
 0x3b7   :  { %1115 = vmatprep.mubr.msk.f32.mxu1 %vm1213_vm4, %v1211_v13  ;;  %1171 = vmatpush3.bf16.msra.mxu1 %v1170_v32 }
 0x3b8   :  { %1172 = vmatprep.subr.bf16.mxu1 %v1212_v40 }
 0x3bb   :  { %1174 = vmatpush3.bf16.msra.mxu1 %v1173_v38 }
 0x3bc   :  { %1181 = vmatprep.subr.bf16.mxu1 %v1212_v40 }
 0x485   :  { %v1088_v56 = vpop.f32.mrb[2].mxu1 }
 0x486   :  { %v398_v59 = vadd.f32 %v1088_v56, %v1004_v55  ;;  %v383_v60 = vpop.f32.mrb[3].mxu1 }
 0x487   :  { %v397_v61 = vadd.f32 %v1004_v55, %v383_v60 }
 0x488   :  { %v402_v62 = vsel %vm211_vm3, %v398_v59, 0.0 }
 0x489   :  { %v1337_v63 = vpop.f32.mrb[4].mxu1  ;;  %403 = vadd.xlane.f32.xlu0 %v402_v62  ;;  %v399_v0 = vsel %vm211_vm3, %v397_v61, 0.0 }
 0x48a   :  { %400 = vadd.xlane.f32.xlu1 %v399_v0  ;;  %v1095_v4 = vpop.f32.mrb[5].mxu1 }
 0x49b   :  { %1195 = vperm.xlu1 %1193, %v1194_v9  }
 0x516   :  { %v404_v10 = vpop.xlane.xlu0 %403 }
 0x517   :  { %v401_v11 = vpop.xlane.xlu1 %400 }
 0x518   :  { %v405_v12 = vadd.f32 %v404_v10, %v401_v11 }
 0x51a   :  { %v407_v14 = vmul.f32 0.015625, %v405_v12 }
 0x51b   :  { %v1196_v43 = vpop.permute.xlu1 %1195 }
 0x51c   :  { %v408_v15 = vsub.f32 %v397_v61, %v407_v14  ;;  %v409_v16 = vsub.f32 %v398_v59, %v407_v14  ;;  %v1198_v61 = vunpack.i.h.bf16 %v1196_v43  ;;  %v1197_v62 = vunpack.i.l.bf16 %v1196_v43 }
 0x51e   :  { %v410_v18 = vmul.f32 %v408_v15, %v408_v15  ;;  %v411_v20 = vmul.f32 %v409_v16, %v409_v16 }
 0x520   :  { %v412_v19 = vsel %vm211_vm3, %v410_v18, 0.0  ;;  %v415_v22 = vsel %vm211_vm3, %v411_v20, 0.0 }
 0x521   :  { %413 = vadd.xlane.f32.xlu1 %v412_v19 }
 0x525   :  { %416 = vadd.xlane.f32.xlu1 %v415_v22 }
 0x536   :  { %1200 = vperm.xlu1 %1193, %v1199_v29  }
 0x5ae   :  { %v414_v44 = vpop.xlane.xlu1 %413 }
 0x5b2   :  { %v417_v45 = vpop.xlane.xlu1 %416 }
 0x5b3   :  { %v418_v46 = vadd.f32 %v417_v45, %v414_v44  ;;  %v643_v44 = vmul.f32 %v642_v33, %v1337_v63  ;;  %v825_v63 = vld [vmem:[%s1443_s6 + $0xa8] sm:$0xff] }
 0x5b5   :  { %v419_v47 = vmul.f32 0.015625, %v418_v46 }
 0x5b6   :  { %v1201_v58 = vpop.permute.xlu1 %1200 }
 0x5b7   :  { %v420_v48 = vadd.f32 1e-05, %v419_v47  ;;  %v1203_v0 = vunpack.i.h.bf16 %v1201_v58  ;;  %v1202_v1 = vunpack.i.l.bf16 %v1201_v58 }
 0x5b9   :  { %1208 = vrsqrt.f32 %v420_v48 }
 0x5c3   :  { %v1209_v49 = vpop.eup %1208 }
 0x5c4   :  { %v422_v51 = vmul.f32 %v1209_v49, %v408_v15  ;;  %v423_v52 = vmul.f32 %v1209_v49, %v409_v16 }
 0x5c6   :  { %v425_v54 = vmul.f32 %v424_v50, %v422_v51  ;;  %v426_v55 = vmul.f32 %v424_v50, %v423_v52  ;;  %v824_v50 = vld [vmem:[%s1443_s6 + $0xa0] sm:$0xff]  ;;  %v826_v52 = vld [vmem:[%s1443_s6 + $0xb0] sm:$0xff] }
 0x5c7   :  { %v1176_v51 = vpack.c.bf16 %v825_v63, %v824_v50 }
 0x5c8   :  { %v428_v56 = vadd.f32 %v427_v53, %v425_v54  ;;  %v429_v57 = vadd.f32 %v427_v53, %v426_v55  ;;  %v907_v54 = vld [vmem:[%s1443_s6 + $0xc8] sm:$0xff]  ;;  %v908_v55 = vld [vmem:[%s1443_s6 + $0xd0] sm:$0xff] }
 0x5ca   :  { %vm430_vm10 = vcmp.ge.f32.partialorder %v428_v56, 0.0  ;;  %vm431_vm11 = vcmp.ge.f32.partialorder %v429_v57, 0.0  ;;  %v432_v59 = vmul.f32 0.01, %v428_v56  ;;  %v433_v60 = vmul.f32 0.01, %v429_v57 }
 0x5cc   :  { %v434_v2 = vsel %vm430_vm10, %v428_v56, %v432_v59  ;;  %v435_v3 = vsel %vm431_vm11, %v429_v57, %v433_v60  ;;  %v1182_v56 = vpack.c.bf16 %v908_v55, %v907_v54  ;;  %v1011_v60 = vld [vmem:[%s1443_s6 + $0x98] ss:$0 sm:$0xff] }
 0x5cd   :  { %v545_v4 = vmul.f32 %v1197_v62, %v434_v2  ;;  %v546_v5 = vmul.f32 %v1198_v61, %v435_v3  ;;  %v520_v6 = vmul.f32 %v1203_v0, %v435_v3  ;;  %v519_v7 = vmul.f32 %v1202_v1, %v434_v2  ;;  %v909_v2 = vld [vmem:[%s1443_s6 + $0xd8] sm:$0xff] }
 0x5cf   :  { %v547_v8 = vsel %vm211_vm3, %v545_v4, 0.0  ;;  %v554_v9 = vsel %vm211_vm3, %v546_v5, 0.0  ;;  %v528_v10 = vsel %vm211_vm3, %v520_v6, 0.0  ;;  %v521_v11 = vsel %vm211_vm3, %v519_v7, 0.0  ;;  %v1012_v4 = vld [vmem:[%s1443_s6 + $0xc0] ss:$0 sm:$0xff] }
 0x5d0   :  { %v548_v12 = vrot.slane %v547_v8, 4  ;;  %v555_v14 = vrot.slane %v554_v9, 4  ;;  %v529_v15 = vrot.slane %v528_v10, 4  ;;  %v522_v16 = vrot.slane %v521_v11, 4 }
 0x5d2   :  { %v549_v17 = vadd.f32 %v548_v12, %v547_v8  ;;  %v556_v18 = vadd.f32 %v555_v14, %v554_v9  ;;  %v530_v19 = vadd.f32 %v529_v15, %v528_v10  ;;  %v523_v20 = vadd.f32 %v522_v16, %v521_v11  ;;  %v1014_v9 = vld [vmem:[%s1443_s6 + $0xe8] ss:$0 sm:$0xff] }
 0x5d4   :  { %v550_v21 = vrot.slane %v549_v17, 2  ;;  %v557_v22 = vrot.slane %v556_v18, 2  ;;  %v531_v23 = vrot.slane %v530_v19, 2  ;;  %v524_v24 = vrot.slane %v523_v20, 2 }
 0x5d6   :  { %v551_v25 = vadd.f32 %v550_v21, %v549_v17  ;;  %v558_v26 = vadd.f32 %v557_v22, %v556_v18  ;;  %v532_v27 = vadd.f32 %v531_v23, %v530_v19  ;;  %v525_v28 = vadd.f32 %v524_v24, %v523_v20 }
 0x5d8   :  { %v552_v29 = vrot.slane %v551_v25, 1  ;;  %v559_v30 = vrot.slane %v558_v26, 1  ;;  %v533_v31 = vrot.slane %v532_v27, 1  ;;  %v526_v32 = vrot.slane %v525_v28, 1 }
 0x5da   :  { %v553_v35 = vadd.f32 %v552_v29, %v551_v25  ;;  %v560_v36 = vadd.f32 %v559_v30, %v558_v26  ;;  %v534_v37 = vadd.f32 %v533_v31, %v532_v27  ;;  %v527_v38 = vadd.f32 %v526_v32, %v525_v28 }
 0x5dc   :  { %v646_v39 = vmul.f32 %v645_v34, %v527_v38  ;;  %v647_v41 = vmul.f32 %v645_v34, %v534_v37  ;;  %v654_v42 = vmul.f32 %v645_v34, %v553_v35  ;;  %v655_v43 = vmul.f32 %v645_v34, %v560_v36 }
 0x5de   :  { %v651_v45 = vsel %vm650_vm12, %v647_v41, %v646_v39  ;;  %v659_v46 = vsel %vm658_vm13, %v655_v43, %v654_v42 }
 0x5df   :  { %v653_v47 = vadd.f32 %v651_v45, %v643_v44  ;;  %v661_v48 = vadd.f32 %v659_v46, %v643_v44 }
 0x5e1   :  { %1116 = vmatmul.mubr.msk.f32.vlgmr.msra.gmra.mrb[6].mxu1 %vm211_vm3, %v653_v47  ;;  %v671_v49 = vrot.slane %v661_v48, 2 }
 0x5e2   :  { %1137 = vmatprep.mubr.msk.f32.mxu1 %vm1213_vm4, %v1211_v13  ;;  %1183 = vmatpush3.bf16.msra.mxu1 %v1182_v56 }
 0x5e3   :  { %1105 = vmatmul.mubr.msk.f32.vlgmr.msra.gmra.mrb[4].mxu0 %vm211_vm3, %v671_v49  ;;  %1184 = vmatprep.subr.bf16.mxu1 %v1212_v40 }
 0x5e4   :  { %1126 = vmatprep.mubr.msk.f32.mxu0 %vm1213_vm4, %v1211_v13  ;;  %1177 = vmatpush3.bf16.msra.mxu0 %v1176_v51  ;;  %v827_v13 = vld [vmem:[%s1443_s6 + $0xb8] sm:$0xff] }
 0x5e5   :  { %1178 = vmatprep.subr.bf16.mxu0 %v1212_v40  ;;  %v1179_v53 = vpack.c.bf16 %v827_v13, %v826_v52  ;;  %v910_v40 = vld [vmem:[%s1443_s6 + $0xe0] sm:$0xff] }
 0x5e6   :  { %v1185_v3 = vpack.c.bf16 %v910_v40, %v909_v2 }
 0x5e8   :  { %1180 = vmatpush3.bf16.msra.mxu0 %v1179_v53  ;;  %1186 = vmatpush3.bf16.msra.mxu1 %v1185_v3 }
 0x6b4   :  { %v813_v57 = vpop.f32.mrb[6].mxu1 }
 0x6b5   :  { %v1117_v58 = vpop.f32.mrb[7].mxu1 }
 0x6b6   :  { %v740_v59 = vpop.f32.mrb[4].mxu0 }
 0x6b7   :  { %v814_v61 = vadd.f32 %v813_v57, %v740_v59  ;;  %v1106_v62 = vpop.f32.mrb[5].mxu0 }
 0x6b9   :  { %v822_v0 = vadd.f32 %v1011_v60, %v814_v61 }
 0x6bb   :  { %v823_v1 = vmax.f32 %v822_v0, 0.0 }
 0x6bd   :  { %1127 = vmatmul.mubr.msk.f32.vlgmr.msra.gmra.mrb[6].mxu0 %vm211_vm3, %v823_v1 }
 0x790   :  { %v902_v5 = vpop.f32.mrb[6].mxu0 }
 0x791   :  { %v903_v6 = vadd.f32 %v1012_v4, %v902_v5  ;;  %v1128_v7 = vpop.f32.mrb[7].mxu0 }
 0x793   :  { %v906_v8 = vmax.f32 %v903_v6, 0.0 }
 0x795   :  { %1138 = vmatmul.mubr.msk.f32.vlgmr.msra.gmra.mrb[8].mxu1 %vm211_vm3, %v906_v8 }
 0x868   :  { %v985_v10 = vpop.f32.mrb[8].mxu1 }
 0x869   :  { %v986_v11 = vadd.f32 %v1014_v9, %v985_v10  ;;  %v1139_v12 = vpop.f32.mrb[9].mxu1 }
 0x86b   :  { %v989_v14 = vmax.f32 %v986_v11, 0.0 }
 0x86d   :  { %991 = vst.msk [vmem:[%s1447_s7] sm:$0x3] %vm990_vm14, %v989_v14 }

</bundles_post_ra>
